<compile_context>
chip_gen: v5e
topology: v5e:2x2
jax: 0.10.0
libtpu: 0.0.40
codegen_flags: <defaults>
</compile_context>

<pallas_src>
import jax
import jax.numpy as jnp
from jax.experimental import pallas as pl
from jax.experimental.pallas import tpu as pltpu


def _round_up(x, m):
    return ((x + m - 1) // m) * m


def _make_normalize_kernel(tau: float, out_dtype):
    inv_tau = 1.0 / float(tau)

    def kernel(z1_ref, z2_ref, z1n_ref, z2n_ref, d11_ref, d22_ref, ld12_ref):
        x1 = z1_ref[...].astype(jnp.float32)
        x2 = z2_ref[...].astype(jnp.float32)
        # F.normalize(dim=1, eps=1e-12)
        n1 = jnp.sqrt(jnp.sum(x1 * x1, axis=1, keepdims=True))
        n2 = jnp.sqrt(jnp.sum(x2 * x2, axis=1, keepdims=True))
        q1 = x1 / jnp.maximum(n1, 1e-12)
        q2 = x2 / jnp.maximum(n2, 1e-12)
        z1n_ref[...] = q1.astype(out_dtype)
        z2n_ref[...] = q2.astype(out_dtype)
        # Exact f32 diagonal statistics: refl diagonals are exp(||z_n||^2/tau)
        # (== exp(1/tau) unless a row is all-zero, handled exactly), and
        # ld12 is the log of the between-similarity diagonal.
        d11_ref[...] = jnp.exp(jnp.sum(q1 * q1, axis=1, keepdims=True) * inv_tau)
        d22_ref[...] = jnp.exp(jnp.sum(q2 * q2, axis=1, keepdims=True) * inv_tau)
        ld12_ref[...] = jnp.sum(q1 * q2, axis=1, keepdims=True) * inv_tau

    return kernel


def _make_sim_kernel(tau: float):
    inv_tau = 1.0 / float(tau)
    # Contract the last dim of both operands: A @ B^T without materializing B^T.
    dn = (((1,), (1,)), ((), ()))

    def kernel(q1_ref, q2_ref, k1_ref, k2_ref,
               denom1_ref, denom2r_ref, denom2c_ref):
        i = pl.program_id(0)          # query-row tile
        k = pl.program_id(1)          # key-row tile (reduction axis, innermost)

        q1 = q1_ref[...]              # (tq, d_pad) mm_dtype (already normalized)
        q2 = q2_ref[...]
        k1 = k1_ref[...]              # (tk, d_pad) mm_dtype
        k2 = k2_ref[...]

        def sim_exp(a, b):
            s = jax.lax.dot_general(a, b, dn, preferred_element_type=jnp.float32)
            # cosine sims are bounded by 1 -> no max-subtraction needed before exp.
            return jnp.exp(s * inv_tau)

        s11 = sim_exp(q1, k1)         # exp(sim(z1, z1)/tau) tile
        s22 = sim_exp(q2, k2)         # exp(sim(z2, z2)/tau) tile
        s12 = sim_exp(q1, k2)         # exp(sim(z1, z2)/tau) tile
        # s21 == s12.T: not recomputed; its row sums are column sums of s12.

        r1 = jnp.sum(s11 + s12, axis=1, keepdims=True)   # (tq, 1)
        r2 = jnp.sum(s22, axis=1, keepdims=True)         # (tq, 1)
        c21 = jnp.sum(s12, axis=0, keepdims=True)        # (1, tk) rowsum of s21

        # Key-indexed accumulator: resident in VMEM across the whole grid.
        @pl.when(jnp.logical_and(i == 0, k == 0))
        def _():
            denom2c_ref[...] = jnp.zeros_like(denom2c_ref)

        denom2c_ref[pl.ds(k, 1), :] += c21

        @pl.when(k == 0)
        def _():
            denom1_ref[...] = r1
            denom2r_ref[...] = r2

        @pl.when(k != 0)
        def _():
            denom1_ref[...] += r1
            denom2r_ref[...] += r2

    return kernel


def grace_loss(proj_z1, proj_z2, tau: float, *, tq: int = 256, tk: int = 512,
               use_bf16_matmul: bool = True,
               vmem_limit_bytes: int = 32 * 1024 * 1024):
    """Pallas TPU implementation of GraceLoss(tau)(proj_z1, proj_z2)."""
    assert proj_z1.shape == proj_z2.shape and proj_z1.ndim == 2
    n, d = proj_z1.shape

    mm_dtype = jnp.bfloat16 if use_bf16_matmul else jnp.float32
    sub = 16 if use_bf16_matmul else 8     # packed-sublane granularity of mm_dtype

    # Tile sizing.  Tune per generation: v5e keep tq/tk modest (128 / 256-512),
    # v6e can take 256-512 query tiles and tk up to ~1-2k, v7x keep the budget
    # for the 64 MiB VMEM.  tk is forced to a multiple of tq so one padded
    # length serves both axes.
    n_sub = _round_up(n, sub)
    tq = min(_round_up(tq, sub), n_sub)
    tk = min(_round_up(tk, sub), n_sub)
    if tk < tq:
        tq = tk
    tk = (tk // tq) * tq
    n_pad = _round_up(n, tk)
    d_pad = _round_up(d, 128)              # pad MXU contraction depth to a native pass
    ni, nk = n_pad // tq, n_pad // tk

    def pad(z):                            # zero padding -> padded sims exp(0) == 1
        return jnp.pad(z, ((0, n_pad - n), (0, d_pad - d)))

    z1p, z2p = pad(proj_z1), pad(proj_z2)

    # ---- Pass 1: normalize once, cast to matmul dtype, exact diag stats. ----
    z1n, z2n, d11, d22, ld12 = pl.pallas_call(
        _make_normalize_kernel(tau, mm_dtype),
        grid=(ni,),
        in_specs=[
            pl.BlockSpec((tq, d_pad), lambda i: (i, 0)),
            pl.BlockSpec((tq, d_pad), lambda i: (i, 0)),
        ],
        out_specs=(
            pl.BlockSpec((tq, d_pad), lambda i: (i, 0)),
            pl.BlockSpec((tq, d_pad), lambda i: (i, 0)),
            pl.BlockSpec((tq, 1), lambda i: (i, 0)),
            pl.BlockSpec((tq, 1), lambda i: (i, 0)),
            pl.BlockSpec((tq, 1), lambda i: (i, 0)),
        ),
        out_shape=(
            jax.ShapeDtypeStruct((n_pad, d_pad), mm_dtype),
            jax.ShapeDtypeStruct((n_pad, d_pad), mm_dtype),
            jax.ShapeDtypeStruct((n_pad, 1), jnp.float32),
            jax.ShapeDtypeStruct((n_pad, 1), jnp.float32),
            jax.ShapeDtypeStruct((n_pad, 1), jnp.float32),
        ),
        compiler_params=pltpu.CompilerParams(
            dimension_semantics=("parallel",),
            vmem_limit_bytes=vmem_limit_bytes,
        ),
    )(z1p, z2p)

    # ---- Pass 2: tiled, mask-free exp-similarity row/column sums. ----
    denom1, denom2r, denom2c = pl.pallas_call(
        _make_sim_kernel(tau),
        grid=(ni, nk),
        in_specs=[
            pl.BlockSpec((tq, d_pad), lambda i, k: (i, 0)),   # z1 query tile
            pl.BlockSpec((tq, d_pad), lambda i, k: (i, 0)),   # z2 query tile
            pl.BlockSpec((tk, d_pad), lambda i, k: (k, 0)),   # z1 key tile
            pl.BlockSpec((tk, d_pad), lambda i, k: (k, 0)),   # z2 key tile
        ],
        out_specs=(
            pl.BlockSpec((tq, 1), lambda i, k: (i, 0)),       # denom1 (acc over k)
            pl.BlockSpec((tq, 1), lambda i, k: (i, 0)),       # refl(z2) part of denom2
            pl.BlockSpec((nk, tk), lambda i, k: (0, 0)),      # colsums of s12 (resident)
        ),
        out_shape=(
            jax.ShapeDtypeStruct((n_pad, 1), jnp.float32),
            jax.ShapeDtypeStruct((n_pad, 1), jnp.float32),
            jax.ShapeDtypeStruct((nk, tk), jnp.float32),
        ),
        compiler_params=pltpu.CompilerParams(
            # Both axes "arbitrary": the key-indexed accumulator is shared
            # across query tiles, so the i axis cannot be megacore-parallel.
            dimension_semantics=("arbitrary", "arbitrary"),
            vmem_limit_bytes=vmem_limit_bytes,
        ),
    )(z1n, z2n, z1n, z2n)

    # ---- O(N) epilogue ----
    # Padded rows/columns are zero after normalization, so each contributes
    # exactly exp(0) == 1 to every sum; strip those constants here instead of
    # masking inside the tiled loop.
    pad_cnt = jnp.float32(n_pad - n)
    d1 = denom1[:n, 0] - d11[:n, 0] - 2.0 * pad_cnt
    d2 = denom2r[:n, 0] - d22[:n, 0] + denom2c.reshape(-1)[:n] - 2.0 * pad_cnt
    # l1 = log(d1) - ld12 ; l2 = log(d2) - ld12 ; loss = mean(0.5*(l1+l2))
    row_loss = 0.5 * (jnp.log(d1) + jnp.log(d2)) - ld12[:n, 0]
    return jnp.mean(row_loss)


def grace_loss_ref(z1, z2, tau):
    """Pure-JAX f32 reference mirroring the PyTorch module."""
    def norm(x):
        return x / jnp.maximum(jnp.linalg.norm(x, axis=1, keepdims=True), 1e-12)

    def get_loss(a, b):
        an, bn = norm(a), norm(b)
        refl = jnp.exp(an @ an.T / tau)
        betw = jnp.exp(an @ bn.T / tau)
        return -jnp.log(jnp.diag(betw) /
                        (refl.sum(1) + betw.sum(1) - jnp.diag(refl)))

    return jnp.mean((get_loss(z1, z2) + get_loss(z2, z1)) * 0.5)


if __name__ == "__main__":
    TAU = 0.5
    key = jax.random.PRNGKey(0)
    k1, k2, k3, k4 = jax.random.split(key, 4)

    # Case 1: tiny single-tile problem (8 nodes, 32-dim projections).
    z1a = jax.random.normal(k1, (8, 32), dtype=jnp.float32)
    z2a = jax.random.normal(k2, (8, 32), dtype=jnp.float32)

    # Case 2: multi-tile path exercising padding / pad-constant removal
    # (45 nodes, 16-row tiles -> 3x3 tile grid with 3 padded rows).
    z1b = jax.random.normal(k3, (45, 32), dtype=jnp.float32)
    z2b = jax.random.normal(k4, (45, 32), dtype=jnp.float32)

    for z1, z2, kw in [(z1a, z2a, {}), (z1b, z2b, dict(tq=16, tk=16))]:
        ref = grace_loss_ref(z1, z2, TAU)

        # Exact f32 matmul path: tight tolerance.
        out_f32 = jax.block_until_ready(
            grace_loss(z1, z2, TAU, use_bf16_matmul=False, **kw))
        assert jnp.allclose(out_f32, ref, atol=1e-4, rtol=1e-4), (out_f32, ref)

        # Default bf16-MXU path: looser tolerance (bf16 similarity rounding).
        out_bf16 = jax.block_until_ready(grace_loss(z1, z2, TAU, **kw))
        assert jnp.allclose(out_bf16, ref, atol=2e-2, rtol=2e-2), (out_bf16, ref)

    print("KERNEL_OK")
</pallas_src>

<mosaic_0001>
module attributes {stable_mosaic.version = 11 : i64} {
  func.func @kernel(%arg0: i32, %arg1: memref<8x128xf32, #tpu.memory_space<vmem>>, %arg2: memref<8x128xf32, #tpu.memory_space<vmem>>, %arg3: memref<8x128xf32, #tpu.memory_space<vmem>>, %arg4: memref<8x128xf32, #tpu.memory_space<vmem>>, %arg5: memref<8x1xf32, #tpu.memory_space<vmem>>, %arg6: memref<8x1xf32, #tpu.memory_space<vmem>>, %arg7: memref<8x1xf32, #tpu.memory_space<vmem>>) attributes {dimension_semantics = [#tpu.dimension_semantics<parallel>], iteration_bounds = array<i64: 1>, scalar_prefetch = 0 : i64, scratch_operands = 0 : i64, tpu.core_type = #tpu.core_type<tc>, window_params = [{transform_indices = @transform_0, window_bounds = array<i64: 8, 128>}, {transform_indices = @transform_1, window_bounds = array<i64: 8, 128>}, {transform_indices = @transform_2, window_bounds = array<i64: 8, 128>}, {transform_indices = @transform_3, window_bounds = array<i64: 8, 128>}, {transform_indices = @transform_4, window_bounds = array<i64: 8, 1>}, {transform_indices = @transform_5, window_bounds = array<i64: 8, 1>}, {transform_indices = @transform_6, window_bounds = array<i64: 8, 1>}]} {
    %c0 = arith.constant 0 : index
    %c0_0 = arith.constant 0 : index
    %0 = vector.load %arg1[%c0, %c0_0] : memref<8x128xf32, #tpu.memory_space<vmem>>, vector<8x128xf32>
    %c0_1 = arith.constant 0 : index
    %c0_2 = arith.constant 0 : index
    %1 = vector.load %arg2[%c0_1, %c0_2] : memref<8x128xf32, #tpu.memory_space<vmem>>, vector<8x128xf32>
    %2 = arith.mulf %0, %0 : vector<8x128xf32>
    %cst = arith.constant dense<0.000000e+00> : vector<8xf32>
    %3 = vector.multi_reduction <add>, %2, %cst [1] : vector<8x128xf32> to vector<8xf32>
    %4 = vector.shape_cast %3 : vector<8xf32> to vector<8x1xf32>
    %5 = math.sqrt %4 : vector<8x1xf32>
    %6 = arith.mulf %1, %1 : vector<8x128xf32>
    %cst_3 = arith.constant dense<0.000000e+00> : vector<8xf32>
    %7 = vector.multi_reduction <add>, %6, %cst_3 [1] : vector<8x128xf32> to vector<8xf32>
    %8 = vector.shape_cast %7 : vector<8xf32> to vector<8x1xf32>
    %9 = math.sqrt %8 : vector<8x1xf32>
    %cst_4 = arith.constant 9.99999996E-13 : f32
    %10 = vector.broadcast %cst_4 : f32 to vector<8x1xf32>
    %11 = arith.maximumf %5, %10 : vector<8x1xf32>
    %12 = vector.broadcast %11 : vector<8x1xf32> to vector<8x128xf32>
    %13 = arith.divf %0, %12 : vector<8x128xf32>
    %cst_5 = arith.constant 9.99999996E-13 : f32
    %14 = vector.broadcast %cst_5 : f32 to vector<8x1xf32>
    %15 = arith.maximumf %9, %14 : vector<8x1xf32>
    %16 = vector.broadcast %15 : vector<8x1xf32> to vector<8x128xf32>
    %17 = arith.divf %1, %16 : vector<8x128xf32>
    %c0_6 = arith.constant 0 : index
    %c0_7 = arith.constant 0 : index
    %18 = vector.load %arg3[%c0_6, %c0_7] : memref<8x128xf32, #tpu.memory_space<vmem>>, vector<8x128xf32>
    tpu.vector_store %arg3[%c0_6, %c0_7], %13 {strides = array<i32>} : memref<8x128xf32, #tpu.memory_space<vmem>>, vector<8x128xf32>,
    %c0_8 = arith.constant 0 : index
    %c0_9 = arith.constant 0 : index
    %19 = vector.load %arg4[%c0_8, %c0_9] : memref<8x128xf32, #tpu.memory_space<vmem>>, vector<8x128xf32>
    tpu.vector_store %arg4[%c0_8, %c0_9], %17 {strides = array<i32>} : memref<8x128xf32, #tpu.memory_space<vmem>>, vector<8x128xf32>,
    %20 = arith.mulf %13, %13 : vector<8x128xf32>
    %cst_10 = arith.constant dense<0.000000e+00> : vector<8xf32>
    %21 = vector.multi_reduction <add>, %20, %cst_10 [1] : vector<8x128xf32> to vector<8xf32>
    %22 = vector.shape_cast %21 : vector<8xf32> to vector<8x1xf32>
    %cst_11 = arith.constant 2.000000e+00 : f32
    %23 = vector.broadcast %cst_11 : f32 to vector<8x1xf32>
    %24 = arith.mulf %22, %23 : vector<8x1xf32>
    %25 = math.exp %24 : vector<8x1xf32>
    %c0_12 = arith.constant 0 : index
    %c0_13 = arith.constant 0 : index
    %26 = vector.load %arg5[%c0_12, %c0_13] : memref<8x1xf32, #tpu.memory_space<vmem>>, vector<8x1xf32>
    tpu.vector_store %arg5[%c0_12, %c0_13], %25 {strides = array<i32>} : memref<8x1xf32, #tpu.memory_space<vmem>>, vector<8x1xf32>,
    %27 = arith.mulf %17, %17 : vector<8x128xf32>
    %cst_14 = arith.constant dense<0.000000e+00> : vector<8xf32>
    %28 = vector.multi_reduction <add>, %27, %cst_14 [1] : vector<8x128xf32> to vector<8xf32>
    %29 = vector.shape_cast %28 : vector<8xf32> to vector<8x1xf32>
    %cst_15 = arith.constant 2.000000e+00 : f32
    %30 = vector.broadcast %cst_15 : f32 to vector<8x1xf32>
    %31 = arith.mulf %29, %30 : vector<8x1xf32>
    %32 = math.exp %31 : vector<8x1xf32>
    %c0_16 = arith.constant 0 : index
    %c0_17 = arith.constant 0 : index
    %33 = vector.load %arg6[%c0_16, %c0_17] : memref<8x1xf32, #tpu.memory_space<vmem>>, vector<8x1xf32>
    tpu.vector_store %arg6[%c0_16, %c0_17], %32 {strides = array<i32>} : memref<8x1xf32, #tpu.memory_space<vmem>>, vector<8x1xf32>,
    %34 = arith.mulf %13, %17 : vector<8x128xf32>
    %cst_18 = arith.constant dense<0.000000e+00> : vector<8xf32>
    %35 = vector.multi_reduction <add>, %34, %cst_18 [1] : vector<8x128xf32> to vector<8xf32>
    %36 = vector.shape_cast %35 : vector<8xf32> to vector<8x1xf32>
    %cst_19 = arith.constant 2.000000e+00 : f32
    %37 = vector.broadcast %cst_19 : f32 to vector<8x1xf32>
    %38 = arith.mulf %36, %37 : vector<8x1xf32>
    %c0_20 = arith.constant 0 : index
    %c0_21 = arith.constant 0 : index
    %39 = vector.load %arg7[%c0_20, %c0_21] : memref<8x1xf32, #tpu.memory_space<vmem>>, vector<8x1xf32>
    tpu.vector_store %arg7[%c0_20, %c0_21], %38 {strides = array<i32>} : memref<8x1xf32, #tpu.memory_space<vmem>>, vector<8x1xf32>,
    return
  }
  func.func @transform_0(%arg0: i32) -> (i32, i32) {
    %c0_i32 = arith.constant 0 : i32
    %c0_i32_0 = arith.constant 0 : i32
    return %arg0, %c0_i32 : i32, i32
  }
  func.func @transform_1(%arg0: i32) -> (i32, i32) {
    %c0_i32 = arith.constant 0 : i32
    %c0_i32_0 = arith.constant 0 : i32
    return %arg0, %c0_i32 : i32, i32
  }
  func.func @transform_2(%arg0: i32) -> (i32, i32) {
    %c0_i32 = arith.constant 0 : i32
    %c0_i32_0 = arith.constant 0 : i32
    return %arg0, %c0_i32 : i32, i32
  }
  func.func @transform_3(%arg0: i32) -> (i32, i32) {
    %c0_i32 = arith.constant 0 : i32
    %c0_i32_0 = arith.constant 0 : i32
    return %arg0, %c0_i32 : i32, i32
  }
  func.func @transform_4(%arg0: i32) -> (i32, i32) {
    %c0_i32 = arith.constant 0 : i32
    %c0_i32_0 = arith.constant 0 : i32
    return %arg0, %c0_i32 : i32, i32
  }
  func.func @transform_5(%arg0: i32) -> (i32, i32) {
    %c0_i32 = arith.constant 0 : i32
    %c0_i32_0 = arith.constant 0 : i32
    return %arg0, %c0_i32 : i32, i32
  }
  func.func @transform_6(%arg0: i32) -> (i32, i32) {
    %c0_i32 = arith.constant 0 : i32
    %c0_i32_0 = arith.constant 0 : i32
    return %arg0, %c0_i32 : i32, i32
  }
}

</mosaic_0001>

<bundles_post_ra>
// kernel: tpu_custom_call.1
= control target key start
LH: loop header
LB: loop body
LE: loop exit
PB: predicated region body
PF: predicated region fallthrough
CT: control target
= control target key end

     0   :  { %12 = vsyncpa [#allocation3], 0  ;;  %s363_s0 = inlined_call_operand.hbm [shape: f32[8,128], index: 0, kind: input, shape index: {}]   ;;  %s364_s1 = inlined_call_operand.hbm [shape: f32[8,128], index: 1, kind: input, shape index: {}]   ;;  %s365_s2 = inlined_call_operand.hbm [shape: f32[8,128], index: 2, kind: output, shape index: {0}]   ;;  %s366_s3 = inlined_call_operand.hbm [shape: f32[8,128], index: 3, kind: output, shape index: {1}]   ;;  %s367_s4 = inlined_call_operand.vmem [shape: f32[8,1], index: 4, kind: output, shape index: {2}]   ;;  %s368_s5 = inlined_call_operand.vmem [shape: f32[8,1], index: 5, kind: output, shape index: {3}]   ;;  %s369_s6 = inlined_call_operand.vmem [shape: f32[8,1], index: 6, kind: output, shape index: {4}]  }
   0x1   :  { %13 = vsyncpa [#allocation6], 0 }
   0x2   :  { %14 = vsyncpa [#allocation4], 0 }
   0x3   :  { %15 = vsyncpa [#allocation9], 0  ;;  %s21_s23 = sshll.u32 %s363_s0, 4  ;;  %s298_s24 = smov [#allocation2]   ;;  %s22_s23 = int_to_ptr.hbm [resolvable:$true] %s21_s23 }
   0x4   :  { %s23_s25 = sshll.u32 %s298_s24, 4  ;;  %s32_s28 = sshll.u32 %s364_s1, 4  ;;  %s24_s25 = int_to_ptr.vmem [resolvable:$true] %s23_s25  ;;  %s33_s28 = int_to_ptr.hbm [resolvable:$true] %s32_s28 }
   0x5   :  { %26 = dma.hbm_to_vmem [thread:$0]  %s22_s23, 128, %s24_s25, [#allocation3]  }
   0x6   :  { %s299_s29 = smov [#allocation5]  }
   0x7   :  { %s34_s30 = sshll.u32 %s299_s29, 4  ;;  %s35_s30 = int_to_ptr.vmem [resolvable:$true] %s34_s30 }
   0x8   :  { %37 = dma.hbm_to_vmem [thread:$0]  %s33_s28, 128, %s35_s30, [#allocation6]  }
   0x9   :  { %290 = dma.done.wait [#allocation3], 128  }
   0xa   :  { %291 = vsyncadd [#allocation3], 4294967168 }
   0xb   :  { %292 = dma.done.wait [#allocation6], 128  }
   0xc   :  { %293 = vsyncadd [#allocation6], 4294967168  ;;  %v46_v0 = vld [vmem:[#allocation2] sm:$0xff]  ;;  %v343_v2 = vld [vmem:[#allocation5] sm:$0xff]  ;;  %s300_s0 = smov [#allocation7]   ;;  %s139_s9 = sshll.u32 %s365_s2, 4  ;;  %s140_s9 = int_to_ptr.hbm [resolvable:$true] %s139_s9 }
   0xd   :  { %v48_v1 = vmul.f32 %v46_v0, %v46_v0  ;;  %v63_v3 = vmul.f32 %v343_v2, %v343_v2  ;;  %s137_s1 = sshll.u32 %s300_s0, 4  ;;  %s301_s10 = smov [#allocation8]   ;;  %vm118_vm12 = vcmask 7168   ;;  %s138_s1 = int_to_ptr.vmem [resolvable:$true] %s137_s1 }
   0xe   :  { %s148_s11 = sshll.u32 %s301_s10, 4  ;;  %s150_s14 = sshll.u32 %s366_s3, 4  ;;  %s149_s11 = int_to_ptr.vmem [resolvable:$true] %s148_s11  ;;  %s151_s14 = int_to_ptr.hbm [resolvable:$true] %s150_s14 }
   0xf   :  { %49 = vadd.xlane.f32.xlu0 %v48_v1 }
  0x17   :  { %64 = vadd.xlane.f32.xlu0 %v63_v3 }
  0x82   :  { %v50_v4 = vpop.xlane.xlu0 %49 }
  0x83   :  { %182 = vrsqrt.f32 %v50_v4  ;;  %vm58_vm0 = vcmp.eq.f32.partialorder %v50_v4, inf  ;;  %v61_v16 = vand.u32 2147483648, %v50_v4  ;;  %vm60_vm1 = vcmp.eq.f32.partialorder %v50_v4, 0.0 }
  0x89   :  { %v183_v5 = vpop.eup %182 }
  0x8a   :  { %v52_v6 = vmul.f32 %v183_v5, %v50_v4  ;;  %v65_v7 = vpop.xlane.xlu0 %64 }
  0x8b   :  { %184 = vrsqrt.f32 %v65_v7  ;;  %vm73_vm2 = vcmp.eq.f32.partialorder %v65_v7, inf  ;;  %v76_v24 = vand.u32 2147483648, %v65_v7  ;;  %vm75_vm3 = vcmp.eq.f32.partialorder %v65_v7, 0.0 }
  0x8c   :  { %v53_v8 = vmul.f32 %v183_v5, %v52_v6 }
  0x8e   :  { %v54_v9 = vmul.f32 0.5, %v53_v8 }
  0x90   :  { %v55_v10 = vsub.f32 1.5, %v54_v9 }
  0x91   :  { %v185_v11 = vpop.eup %184 }
  0x92   :  { %v56_v12 = vmul.f32 %v183_v5, %v55_v10  ;;  %v67_v13 = vmul.f32 %v185_v11, %v65_v7 }
  0x94   :  { %v57_v14 = vmul.f32 %v56_v12, %v50_v4  ;;  %v68_v15 = vmul.f32 %v185_v11, %v67_v13 }
  0x96   :  { %v59_v17 = vsel %vm58_vm0, %v50_v4, %v57_v14  ;;  %v69_v18 = vmul.f32 0.5, %v68_v15 }
  0x97   :  { %v62_v19 = vsel %vm60_vm1, %v61_v16, %v59_v17 }
  0x98   :  { %v78_v20 = vmax.f32 %v62_v19, 1e-12  ;;  %v70_v21 = vsub.f32 1.5, %v69_v18 }
  0x9a   :  { %186 = vrcp.f32 %v78_v20  ;;  %v71_v22 = vmul.f32 %v185_v11, %v70_v21  ;;  %v90_v31 = vand.u32 2147483648, %v78_v20  ;;  %v88_v33 = vand.u32 2147483647, %v78_v20 }
  0x9b   :  { %vm84_vm5 = vweird.f32 %v78_v20 }
  0x9c   :  { %v72_v23 = vmul.f32 %v71_v22, %v65_v7  ;;  %v91_v36 = vor.u32 1.1754944e-38, %v90_v31  ;;  %vm89_vm7 = vcmp.eq.f32.partialorder %v88_v33, 8.507059e+37 }
  0x9e   :  { %v74_v25 = vsel %vm73_vm2, %v65_v7, %v72_v23 }
  0x9f   :  { %v77_v26 = vsel %vm75_vm3, %v76_v24, %v74_v25 }
  0xa0   :  { %v187_v27 = vpop.eup %186  ;;  %v94_v28 = vmax.f32 %v77_v26, 1e-12 }
  0xa1   :  { %v80_v29 = vmul.f32 %v187_v27, %v78_v20  ;;  %vm85_vm4 = vweird.f32 %v187_v27 }
  0xa2   :  { %188 = vrcp.f32 %v94_v28  ;;  %vm86_vm6 = vmor %vm84_vm5, %vm85_vm4  ;;  %v106_v42 = vand.u32 2147483648, %v94_v28  ;;  %v104_v45 = vand.u32 2147483647, %v94_v28  ;;  %vm100_vm9 = vweird.f32 %v94_v28 }
  0xa3   :  { %v81_v30 = vsub.f32 1.0, %v80_v29 }
  0xa4   :  { %v107_v47 = vor.u32 1.1754944e-38, %v106_v42  ;;  %vm105_vm11 = vcmp.eq.f32.partialorder %v104_v45, 8.507059e+37 }
  0xa5   :  { %v82_v32 = vmul.f32 %v187_v27, %v81_v30 }
  0xa7   :  { %v83_v34 = vadd.f32 %v187_v27, %v82_v32 }
  0xa8   :  { %v189_v35 = vpop.eup %188 }
  0xa9   :  { %v87_v37 = vsel %vm86_vm6, %v187_v27, %v83_v34  ;;  %v96_v38 = vmul.f32 %v189_v35, %v94_v28  ;;  %vm101_vm8 = vweird.f32 %v189_v35 }
  0xaa   :  { %v92_v39 = vsel %vm89_vm7, %v91_v36, %v87_v37  ;;  %vm102_vm10 = vmor %vm100_vm9, %vm101_vm8 }
  0xab   :  { %v93_v40 = vmul.f32 %v92_v39, %v46_v0  ;;  %v97_v41 = vsub.f32 1.0, %v96_v38 }
  0xad   :  { %v112_v43 = vmul.f32 %v93_v40, %v93_v40  ;;  %110 = vst [vmem:[#allocation7] sm:$0xff] %v93_v40  ;;  %v98_v44 = vmul.f32 %v189_v35, %v97_v41 }
  0xae   :  { %142 = dma.vmem_to_hbm [thread:$0]  %s138_s1, 128, %s140_s9, [#allocation4]  }
  0xaf   :  { %113 = vadd.xlane.f32.xlu1 %v112_v43  ;;  %v99_v46 = vadd.f32 %v189_v35, %v98_v44 }
  0xb1   :  { %v103_v48 = vsel %vm102_vm10, %v189_v35, %v99_v46 }
  0xb2   :  { %v108_v49 = vsel %vm105_vm11, %v107_v47, %v103_v48 }
  0xb3   :  { %v109_v50 = vmul.f32 %v108_v49, %v343_v2 }
  0xb5   :  { %v127_v51 = vmul.f32 %v109_v50, %v93_v40  ;;  %111 = vst [vmem:[#allocation8] sm:$0xff] %v109_v50  ;;  %v120_v52 = vmul.f32 %v109_v50, %v109_v50 }
  0xb6   :  { %153 = dma.vmem_to_hbm [thread:$0]  %s149_s11, 128, %s151_s14, [#allocation9]  }
  0xb7   :  { %128 = vadd.xlane.f32.xlu2 %v127_v51  ;;  %121 = vadd.xlane.f32.xlu1 %v120_v52 }
 0x122   :  { %v114_v53 = vpop.xlane.xlu1 %113 }
 0x123   :  { %v115_v54 = vmul.f32 2.0, %v114_v53 }
 0x125   :  { %v116_v55 = vmul.f32 1.442695, %v115_v54 }
 0x127   :  { %190 = vpow2.f32 %v116_v55 }
 0x12a   :  { %v129_v56 = vpop.xlane.xlu2 %128  ;;  %v122_v57 = vpop.xlane.xlu1 %121 }
 0x12b   :  { %v130_v58 = vmul.f32 2.0, %v129_v56  ;;  %v123_v59 = vmul.f32 2.0, %v122_v57 }
 0x12d   :  { %v191_v60 = vpop.eup %190  ;;  %131 = vst.msk [vmem:[%s369_s6] sm:$0xff] %vm118_vm12, %v130_v58  ;;  %v124_v61 = vmul.f32 1.442695, %v123_v59 }
 0x12e   :  { %119 = vst.msk [vmem:[%s367_s4] sm:$0xff] %vm118_vm12, %v191_v60 }
 0x12f   :  { %192 = vpow2.f32 %v124_v61 }
 0x135   :  { %v193_v62 = vpop.eup %192 }
 0x136   :  { %126 = vst.msk [vmem:[%s368_s5] sm:$0xff] %vm118_vm12, %v193_v62 }
 0x137   :  { %294 = dma.done.wait [#allocation4], 128  }
 0x138   :  { %295 = vsyncadd [#allocation4], 4294967168 }
 0x139   :  { %296 = dma.done.wait [#allocation9], 128  }
 0x13a   :  { %297 = vsyncadd [#allocation9], 4294967168 }
 0x13b   :  { %174 = vsyncpa [#allocation3], 1 }
 0x13c   :  { %175 = vsyncpa [#allocation6], 1 }
 0x13d   :  { %176 = vsyncpa [#allocation4], 1 }
 0x13e   :  { %177 = vsyncpa [#allocation9], 1 }

</bundles_post_ra>
